<compile_context>
chip_gen: v7x
topology: tpu7x:2x2x1
jax: 0.10.0
libtpu: 0.0.40
codegen_flags: <defaults>
</compile_context>

<pallas_src>
import jax
import jax.numpy as jnp
from jax.experimental import pallas as pl
from jax.experimental.pallas import tpu as pltpu


def _image_emb_kernel(x_ref, w_ref, b_ref, o_ref):
    """One (batch-tile i, K-tile k) grid step.

    x_ref: [bt, tk]  f32 pre-pooled patch features (K slice), cast to bf16 here
    w_ref: [tk, F]   bf16 patch-embedding weight slice (BN pre-folded)
    b_ref: [1, F]    f32 bias (BN pre-folded)
    o_ref: [bt, F]   f32 output; used as the accumulator across K tiles
    """
    k = pl.program_id(1)

    @pl.when(k == 0)
    def _init():
        o_ref[...] = jnp.zeros_like(o_ref)

    xb = x_ref[...].astype(jnp.bfloat16)
    o_ref[...] += jnp.dot(xb, w_ref[...], preferred_element_type=jnp.float32)

    @pl.when(k == pl.num_programs(1) - 1)
    def _finalize():
        # Bias (with eval-mode BN folded in) added after pooling — exact.
        emb = o_ref[...] + b_ref[...]
        # F.normalize(p=2, dim=1): x / max(||x||_2, 1e-12), via rsqrt (EUP).
        sq = jnp.sum(emb * emb, axis=1, keepdims=True)          # [bt, 1]
        inv = jax.lax.rsqrt(jnp.maximum(sq, 1e-24))             # 1/max(||x||,1e-12)
        o_ref[...] = emb * inv


def _fold_bn(params, use_bn):
    """Fold eval-mode BatchNorm1d into the linear weight/bias (exact affine)."""
    w = params["w"]            # [D, F]  (conv weight [F, C, P, P] reshaped [F, D].T)
    b = params["b"]            # [1, F]
    if use_bn:
        s = params["gamma"] * jax.lax.rsqrt(params["var"] + 1e-5)   # [1, F]
        w = w * s
        b = b * s + (params["beta"] - params["mean"] * s)
    return w, b


def _round_up(x, m):
    return (x + m - 1) // m * m


def image_emb_forward(x_nchw, params, *, patch=8, use_bn=False,
                      batch_tile=None, k_tile=None):
    """x_nchw: [B, C, H, W] float32. Returns [B, F] L2-normalized embeddings."""
    B, C, H, W = x_nchw.shape
    P = patch
    assert H % P == 0 and W % P == 0
    nph, npw = H // P, W // P
    D = C * P * P
    F = params["w"].shape[1]
    assert params["w"].shape[0] == D, "weight must be conv weight reshaped [F, C*P*P].T"

    # --- pool-before-matmul (linearity): mean over the patch grid, in f32 ---
    xp = x_nchw.astype(jnp.float32).reshape(B, C, nph, P, npw, P)
    pooled_x = xp.mean(axis=(2, 4)).reshape(B, D)           # [B, D] f32

    # Fold eval-mode BN into the linear; weight bf16 (MXU), bias f32.
    w, b = _fold_bn(params, use_bn)
    w = w.astype(jnp.bfloat16)
    b = b.astype(jnp.float32)

    # --- batch tiling (pad B to a multiple of 8 for f32 sublane tiling) ---
    Bp = max(8, _round_up(B, 8))
    if Bp != B:
        pooled_x = jnp.pad(pooled_x, ((0, Bp - B), (0, 0)))
    if batch_tile is None:
        if Bp >= 16:
            bt = max(8, min(256, (Bp // 2) // 8 * 8))        # >=2 tiles (megacore)
            while Bp % bt != 0:
                bt -= 8
        else:
            bt = Bp
    else:
        bt = batch_tile
        assert Bp % bt == 0 and bt % 8 == 0
    num_b_tiles = Bp // bt

    # --- K tiling: keep weight VMEM-resident when it fits; else >=256 tiles ---
    w_bytes = D * F * 2
    if k_tile is None:
        if w_bytes <= 8 * 1024 * 1024:
            k_tile = D
        else:
            k_tile = D
            for cand in (2048, 1024, 512, 256, 128):
                if D % cand == 0:
                    k_tile = cand
                    break
    else:
        k_tile = min(k_tile, D)
        if D % k_tile != 0:
            k_tile = D
    nk = D // k_tile
    grid = (num_b_tiles, nk)

    # Explicit VMEM budget (v7x-safe: <= 48 MiB).
    vmem_need = (2 * bt * k_tile * 4          # x (double-buffered, f32)
                 + 2 * k_tile * F * 2         # w (double-buffered, bf16)
                 + 2 * bt * F * 4             # out (f32)
                 + 2 * F * 4)                 # bias
    vmem_limit = int(min(max(24 * 1024 * 1024, 2 * vmem_need), 48 * 1024 * 1024))

    out = pl.pallas_call(
        _image_emb_kernel,
        out_shape=jax.ShapeDtypeStruct((Bp, F), jnp.float32),
        grid=grid,
        in_specs=[
            pl.BlockSpec((bt, k_tile), lambda i, k: (i, k)),   # pooled patches
            pl.BlockSpec((k_tile, F),  lambda i, k: (k, 0)),   # weight (resident if nk==1)
            pl.BlockSpec((1, F),       lambda i, k: (0, 0)),   # bias
        ],
        out_specs=pl.BlockSpec((bt, F), lambda i, k: (i, 0)),
        compiler_params=pltpu.CompilerParams(
            dimension_semantics=("parallel", "arbitrary"),
            vmem_limit_bytes=vmem_limit),
    )(pooled_x, w, b)
    return out[:B]


def image_emb_ref(x_nchw, params, *, patch, use_bn):
    """Pure-JAX reference mirroring the kernel math (f32 pre-pool, bf16 matmul)."""
    B, C, H, W = x_nchw.shape
    P = patch
    nph, npw = H // P, W // P
    D = C * P * P
    xp = x_nchw.astype(jnp.float32).reshape(B, C, nph, P, npw, P)
    pooled_x = xp.mean(axis=(2, 4)).reshape(B, D)
    w, b = _fold_bn(params, use_bn)
    feats = jnp.dot(pooled_x.astype(jnp.bfloat16), w.astype(jnp.bfloat16),
                    preferred_element_type=jnp.float32) + b.astype(jnp.float32)
    norm = jnp.sqrt(jnp.sum(feats * feats, axis=1, keepdims=True))
    return feats / jnp.maximum(norm, 1e-12)


def init_params(key, C, P, F):
    D = C * P * P
    k1, _, k3, k4 = jax.random.split(key, 4)
    return {
        # Patch-embed weight: PyTorch conv weight [F, C, P, P] reshaped to [F, D].T
        "w": jax.random.normal(k1, (D, F), jnp.float32) * 0.02,
        "b": jnp.zeros((1, F), jnp.float32),
        # BatchNorm1d(F) params / running stats (deterministic).
        "gamma": jnp.ones((1, F), jnp.float32),
        "beta": jnp.zeros((1, F), jnp.float32),
        "mean": jax.random.normal(k3, (1, F), jnp.float32) * 0.1,
        "var": jnp.abs(jax.random.normal(k4, (1, F), jnp.float32)) + 0.5,
    }


if __name__ == "__main__":
    # Small shapes consistent with the module: NCHW image batch.
    B, C, H, W = 2, 4, 16, 16
    P = 8              # patch size -> 4 patches per image
    F = 128            # feature dim (classifier.in_features)

    key = jax.random.PRNGKey(0)
    kx, kp = jax.random.split(key)
    x = jax.random.normal(kx, (B, C, H, W), jnp.float32)
    params = init_params(kp, C, P, F)

    # Default module config: use_bn=False, then L2 normalize.
    out_no_bn = image_emb_forward(x, params, patch=P, use_bn=False)
    jax.block_until_ready(out_no_bn)

    # use_bn=True path (eval-mode BatchNorm1d folded into w/b).
    out_bn = image_emb_forward(x, params, patch=P, use_bn=True)
    jax.block_until_ready(out_bn)

    assert out_no_bn.shape == (B, F) and out_bn.shape == (B, F)

    # L2 norms should be ~1.
    norms = jnp.linalg.norm(out_no_bn, axis=1)
    assert jnp.allclose(norms, 1.0, atol=1e-4), norms
    norms_bn = jnp.linalg.norm(out_bn, axis=1)
    assert jnp.allclose(norms_bn, 1.0, atol=1e-4), norms_bn

    # Match the pure-JAX reference of the same math.
    ref_no_bn = image_emb_ref(x, params, patch=P, use_bn=False)
    ref_bn = image_emb_ref(x, params, patch=P, use_bn=True)
    assert jnp.allclose(out_no_bn, ref_no_bn, atol=2e-3, rtol=2e-3)
    assert jnp.allclose(out_bn, ref_bn, atol=2e-3, rtol=2e-3)

    print("KERNEL_OK")
</pallas_src>

<mosaic_0001>
module attributes {stable_mosaic.version = 11 : i64} {
  func.func @_image_emb_kernel(%arg0: i32, %arg1: i32, %arg2: memref<8x256xf32, #tpu.memory_space<vmem>>, %arg3: memref<256x128xbf16, #tpu.memory_space<vmem>>, %arg4: memref<1x128xf32, #tpu.memory_space<vmem>>, %arg5: memref<8x128xf32, #tpu.memory_space<vmem>>) attributes {dimension_semantics = [#tpu.dimension_semantics<parallel>, #tpu.dimension_semantics<arbitrary>], iteration_bounds = array<i64: 1, 1>, scalar_prefetch = 0 : i64, scratch_operands = 0 : i64, tpu.core_type = #tpu.core_type<tc>, window_params = [{transform_indices = @transform_0, window_bounds = array<i64: 8, 256>}, {transform_indices = @transform_1, window_bounds = array<i64: 256, 128>}, {pipeline_mode = #tpu.pipeline_mode<synchronous>, transform_indices = @transform_2, window_bounds = array<i64: 1, 128>}, {transform_indices = @transform_3, window_bounds = array<i64: 8, 128>}]} {
    %c0_i32 = arith.constant 0 : i32
    %0 = arith.cmpi eq, %arg1, %c0_i32 : i32
    %1 = arith.extui %0 : i1 to i32
    %c0_i32_0 = arith.constant 0 : i32
    %2 = arith.cmpi ne, %1, %c0_i32_0 : i32
    scf.if %2 {
      %cst_10 = arith.constant 0.000000e+00 : f32
      %13 = vector.broadcast %cst_10 : f32 to vector<8x128xf32>
      %c0_11 = arith.constant 0 : index
      %c0_12 = arith.constant 0 : index
      %14 = vector.load %arg5[%c0_11, %c0_12] : memref<8x128xf32, #tpu.memory_space<vmem>>, vector<8x128xf32>
      tpu.vector_store %arg5[%c0_11, %c0_12], %13 {strides = array<i32>} : memref<8x128xf32, #tpu.memory_space<vmem>>, vector<8x128xf32>,
    } else {
    }
    %c0 = arith.constant 0 : index
    %c0_1 = arith.constant 0 : index
    %3 = vector.load %arg2[%c0, %c0_1] : memref<8x256xf32, #tpu.memory_space<vmem>>, vector<8x256xf32>
    %4 = arith.truncf %3 : vector<8x256xf32> to vector<8x256xbf16>
    %c0_2 = arith.constant 0 : index
    %c0_3 = arith.constant 0 : index
    %5 = vector.load %arg5[%c0_2, %c0_3] : memref<8x128xf32, #tpu.memory_space<vmem>>, vector<8x128xf32>
    %c0_4 = arith.constant 0 : index
    %c0_5 = arith.constant 0 : index
    %6 = vector.load %arg3[%c0_4, %c0_5] : memref<256x128xbf16, #tpu.memory_space<vmem>>, vector<256x128xbf16>
    %cst = arith.constant dense<0.000000e+00> : vector<8x128xf32>
    %7 = tpu.matmul %4, %6, %cst {dimension_numbers = #tpu.dot_dimension_numbers<[1], [0], [0], [1], [0, 0, 1, 1], [], []>} : vector<8x256xbf16>, vector<256x128xbf16>, vector<8x128xf32> -> vector<8x128xf32>
    %8 = arith.addf %5, %7 : vector<8x128xf32>
    %c0_6 = arith.constant 0 : index
    %c0_7 = arith.constant 0 : index
    %9 = vector.load %arg5[%c0_6, %c0_7] : memref<8x128xf32, #tpu.memory_space<vmem>>, vector<8x128xf32>
    tpu.vector_store %arg5[%c0_6, %c0_7], %8 {strides = array<i32>} : memref<8x128xf32, #tpu.memory_space<vmem>>, vector<8x128xf32>,
    %c0_i32_8 = arith.constant 0 : i32
    %10 = arith.cmpi eq, %arg1, %c0_i32_8 : i32
    %11 = arith.extui %10 : i1 to i32
    %c0_i32_9 = arith.constant 0 : i32
    %12 = arith.cmpi ne, %11, %c0_i32_9 : i32
    scf.if %12 {
      %c0_10 = arith.constant 0 : index
      %c0_11 = arith.constant 0 : index
      %13 = vector.load %arg5[%c0_10, %c0_11] : memref<8x128xf32, #tpu.memory_space<vmem>>, vector<8x128xf32>
      %c0_12 = arith.constant 0 : index
      %c0_13 = arith.constant 0 : index
      %14 = vector.load %arg4[%c0_12, %c0_13] : memref<1x128xf32, #tpu.memory_space<vmem>>, vector<1x128xf32>
      %15 = vector.broadcast %14 : vector<1x128xf32> to vector<8x128xf32>
      %16 = arith.addf %13, %15 : vector<8x128xf32>
      %17 = arith.mulf %16, %16 : vector<8x128xf32>
      %cst_14 = arith.constant dense<0.000000e+00> : vector<8xf32>
      %18 = vector.multi_reduction <add>, %17, %cst_14 [1] : vector<8x128xf32> to vector<8xf32>
      %19 = vector.shape_cast %18 : vector<8xf32> to vector<8x1xf32>
      %cst_15 = arith.constant 1.000000e-24 : f32
      %20 = vector.broadcast %cst_15 : f32 to vector<8x1xf32>
      %21 = arith.maximumf %19, %20 : vector<8x1xf32>
      %22 = math.rsqrt %21 : vector<8x1xf32>
      %23 = vector.broadcast %22 : vector<8x1xf32> to vector<8x128xf32>
      %24 = arith.mulf %16, %23 : vector<8x128xf32>
      %c0_16 = arith.constant 0 : index
      %c0_17 = arith.constant 0 : index
      %25 = vector.load %arg5[%c0_16, %c0_17] : memref<8x128xf32, #tpu.memory_space<vmem>>, vector<8x128xf32>
      tpu.vector_store %arg5[%c0_16, %c0_17], %24 {strides = array<i32>} : memref<8x128xf32, #tpu.memory_space<vmem>>, vector<8x128xf32>,
    } else {
    }
    return
  }
  func.func @transform_0(%arg0: i32, %arg1: i32) -> (i32, i32) {
    %c0_i32 = arith.constant 0 : i32
    return %arg0, %arg1 : i32, i32
  }
  func.func @transform_1(%arg0: i32, %arg1: i32) -> (i32, i32) {
    %c0_i32 = arith.constant 0 : i32
    %c0_i32_0 = arith.constant 0 : i32
    return %arg1, %c0_i32 : i32, i32
  }
  func.func @transform_2(%arg0: i32, %arg1: i32) -> (i32, i32) {
    %c0_i32 = arith.constant 0 : i32
    %c0_i32_0 = arith.constant 0 : i32
    %c0_i32_1 = arith.constant 0 : i32
    return %c0_i32, %c0_i32_0 : i32, i32
  }
  func.func @transform_3(%arg0: i32, %arg1: i32) -> (i32, i32) {
    %c0_i32 = arith.constant 0 : i32
    %c0_i32_0 = arith.constant 0 : i32
    return %arg0, %c0_i32 : i32, i32
  }
}

</mosaic_0001>

<bundles_post_ra>
// kernel: tpu_custom_call.1
= control target key start
LH: loop header
LB: loop body
LE: loop exit
PB: predicated region body
PF: predicated region fallthrough
CT: control target
= control target key end

     0   :  { %8 = vsyncpa [#allocation3], 0  ;;  %s463_s0 = inlined_call_operand.hbm [shape: f32[8,256], index: 0, kind: input, shape index: {}]   ;;  %s464_s1 = inlined_call_operand.hbm [shape: bf16[256,128], index: 1, kind: input, shape index: {}]   ;;  %s465_s2 = inlined_call_operand.vmem [shape: f32[1,128], index: 2, kind: input, shape index: {}]   ;;  %s466_s3 = inlined_call_operand.hbm [shape: f32[8,128], index: 3, kind: output, shape index: {}]  }
   0x1   :  { %9 = vsyncpa [#allocation6], 0 }
   0x2   :  { %10 = vsyncpa [#allocation4], 0  ;;  %s392_s12 = smov [#allocation2]   ;;  %s393_s14 = smov [#allocation5]  }
   0x3   :  { %s17_s13 = sshll.u32 %s392_s12, 4  ;;  %s26_s15 = sshll.u32 %s393_s14, 4  ;;  %s18_s13 = int_to_ptr.vmem [resolvable:$true] %s17_s13  ;;  %s417_s15 = int_to_ptr.vmem [resolvable:$true] %s26_s15 }
   0x4   :  { %s320_s18 = scalar_lea.hbm %s463_s0, 256 }
   0x5   :  { %p321_p0 = scmp.ne.s32.totalorder %s463_s0, %s320_s18  ;;  %p324_p1 = scmp.lt.u32.totalorder %s320_s18, %s463_s0 }
   0x7   :  { %p326_p2 = pnand %p324_p1, %p321_p0 }
   0x9   :  { %329 = shalt.err (!%p326_p2)
}
   0xa   :  { %s330_s23 = scalar_lea.vmem %s18_s13, 256  ;;  %p335_p4 = scmp.lt.s32.totalorder %s18_s13, %s18_s13 }
   0xb   :  { %p331_p3 = scmp.ne.s32.totalorder %s18_s13, %s330_s23  ;;  %p336_p5 = scmp.lt.s32.totalorder %s330_s23, %s330_s23 }
   0xd   :  { %p337_p6 = por %p336_p5, %p335_p4 }
   0xf   :  { %p338_p7 = pnand %p337_p6, %p331_p3 }
  0x11   :  { %341 = shalt.err (!%p338_p7)
}
  0x12   :  { %20 = dma.hbm_to_vmem [thread:$0]  %s463_s0, 256, %s18_s13, [#allocation3]  }
  0x13   :  { %s342_s28 = scalar_lea.hbm %s464_s1, 2048 }
  0x14   :  { %p343_p8 = scmp.ne.s32.totalorder %s464_s1, %s342_s28  ;;  %p346_p9 = scmp.lt.u32.totalorder %s342_s28, %s464_s1 }
  0x16   :  { %p348_p10 = pnand %p346_p9, %p343_p8 }
  0x18   :  { %351 = shalt.err (!%p348_p10)
}
  0x19   :  { %s352_s6 = scalar_lea.vmem %s417_s15, 2048  ;;  %p357_p12 = scmp.lt.s32.totalorder %s417_s15, %s417_s15 }
  0x1a   :  { %p353_p11 = scmp.ne.s32.totalorder %s417_s15, %s352_s6  ;;  %p358_p13 = scmp.lt.s32.totalorder %s352_s6, %s352_s6 }
  0x1c   :  { %p359_p0 = por %p358_p13, %p357_p12 }
  0x1e   :  { %p360_p1 = pnand %p359_p0, %p353_p11 }
  0x20   :  { %363 = shalt.err (!%p360_p1)
}
  0x21   :  { %s394_s0 = smov 64   ;;  %s395_s7 = smov 4  }
  0x22   :  { %32 = dma.hbm_to_vmem [thread:$0]  %s464_s1, 2048, %s417_s15, [#allocation6], %s394_s0, %s394_s0, %s395_s7  }
  0x23   :  { %386 = dma.done.wait [#allocation3], 256  }
  0x24   :  { %387 = vsyncadd [#allocation3], 4294967040 }
  0x25   :  { %388 = dma.done.wait [#allocation6], 2048  }
  0x26   :  { %389 = vsyncadd [#allocation6], 4294965248  ;;  %v302_v0 = vld [vmem:[#allocation5 + $0x40] sm:$0xff]   ;;  %v304_v2 = vld [vmem:[#allocation5 + $0x48] sm:$0xff]   ;;  %s396_s11 = smov [#allocation7]  }
  0x27   :  { %v303_v1 = vld [vmem:[#allocation5] sm:$0xff]   ;;  %274 = vmatprep.subr.bf16.mxu0 %v302_v0  ;;  %v305_v3 = vld [vmem:[#allocation5 + $0x8] sm:$0xff]   ;;  %v306_v4 = vld [vmem:[#allocation5 + $0x50] sm:$0xff]   ;;  %s247_s12 = sshll.u32 %s396_s11, 4  ;;  %s248_s12 = int_to_ptr.vmem [resolvable:$true] %s247_s12 }
  0x28   :  { %275 = vmatpush3.bf16.msra.mxu0 %v303_v1  ;;  %v307_v5 = vld [vmem:[#allocation5 + $0x10] sm:$0xff]   ;;  %v308_v6 = vld [vmem:[#allocation5 + $0x58] sm:$0xff]   ;;  %v310_v8 = vld [vmem:[#allocation5 + $0x60] sm:$0xff]   ;;  %s364_s13 = scalar_lea.vmem %s248_s12, 128  ;;  %p369_p3 = scmp.lt.s32.totalorder %s248_s12, %s248_s12 }
  0x29   :  { %276 = vmatprep.subr.bf16.mxu0 %v304_v2  ;;  %v309_v7 = vld [vmem:[#allocation5 + $0x18] sm:$0xff]   ;;  %v311_v9 = vld [vmem:[#allocation5 + $0x20] sm:$0xff]   ;;  %v312_v10 = vld [vmem:[#allocation5 + $0x68] sm:$0xff]   ;;  %p365_p2 = scmp.ne.s32.totalorder %s248_s12, %s364_s13  ;;  %p370_p4 = scmp.lt.s32.totalorder %s364_s13, %s364_s13 }
  0x2a   :  { %v48_v11 = vld [vmem:[#allocation2 + $0x8] sm:$0xff]  ;;  %v313_v13 = vld [vmem:[#allocation5 + $0x28] sm:$0xff]   ;;  %v314_v14 = vld [vmem:[#allocation5 + $0x70] sm:$0xff]  }
  0x2b   :  { %v50_v12 = vpack.c.bf16 %v48_v11, %v48_v11  ;;  %v315_v15 = vld [vmem:[#allocation5 + $0x30] sm:$0xff]   ;;  %v316_v16 = vld [vmem:[#allocation5 + $0x78] sm:$0xff]   ;;  %p371_p5 = por %p370_p4, %p369_p3 }
  0x2c   :  { %277 = vmatpush3.bf16.msra.mxu0 %v305_v3  ;;  %v317_v17 = vld [vmem:[#allocation5 + $0x38] sm:$0xff]   ;;  %v47_v18 = vld [vmem:[#allocation2] sm:$0xff] }
  0x2d   :  { %278 = vmatprep.subr.bf16.mxu0 %v306_v4  ;;  %212 = vmatprep.mubr.bf16.mxu0 %v50_v12  ;;  %v49_v19 = vpack.c.bf16 %v47_v18, %v47_v18  ;;  %v273_v25 = vld [vmem:[%s465_s2] ss:$0 sm:$0xff]  ;;  %p372_p6 = pnand %p371_p5, %p365_p2 }
  0x30   :  { %279 = vmatpush3.bf16.msra.mxu0 %v307_v5 }
  0x31   :  { %280 = vmatprep.subr.bf16.mxu0 %v308_v6 }
  0x34   :  { %281 = vmatpush3.bf16.msra.mxu0 %v309_v7 }
  0x35   :  { %282 = vmatprep.subr.bf16.mxu0 %v310_v8 }
  0x38   :  { %283 = vmatpush3.bf16.msra.mxu0 %v311_v9 }
  0x39   :  { %284 = vmatprep.subr.bf16.mxu0 %v312_v10 }
  0x3c   :  { %285 = vmatpush3.bf16.msra.mxu0 %v313_v13 }
  0x3d   :  { %286 = vmatprep.subr.bf16.mxu0 %v314_v14 }
  0x40   :  { %287 = vmatpush3.bf16.msra.mxu0 %v315_v15 }
  0x41   :  { %288 = vmatprep.subr.bf16.mxu0 %v316_v16 }
  0x44   :  { %289 = vmatpush3.bf16.msra.mxu0 %v317_v17 }
  0x47   :  { %213 = vmatmul.mubr.bf16.vlgmr.msra.gmra.mrb[0].mxu0 %v49_v19 }
 0x11a   :  { %v290_v20 = vpop.f32.mrb[0].mxu0 }
 0x11b   :  { %v291_v21 = vpop.f32.mrb[1].mxu0 }
 0x11c   :  { %v292_v22 = vadd.f32 %v291_v21, %v290_v20  ;;  %v293_v23 = vpop.f32.mrb[2].mxu0 }
 0x11d   :  { %v294_v24 = vpop.f32.mrb[3].mxu0 }
 0x11e   :  { %v233_v26 = vadd.f32 %v292_v22, %v273_v25 }
 0x120   :  { %v234_v27 = vmul.f32 %v233_v26, %v233_v26 }
 0x122   :  { %235 = vadd.xlane.f32.xlu0 %v234_v27 }
 0x1af   :  { %v236_v28 = vpop.xlane.xlu0 %235 }
 0x1b0   :  { %v237_v29 = vmax.f32 %v236_v28, 1e-24 }
 0x1b2   :  { %318 = vrsqrt.f32 %v237_v29 }
 0x1bc   :  { %v319_v30 = vpop.eup %318 }
 0x1bd   :  { %v239_v31 = vmul.f32 %v319_v30, %v233_v26 }
 0x1bf   :  { %240 = vst [vmem:[#allocation7] sm:$0xff] %v239_v31 }
 0x1c0   :  { %375 = shalt.err (!%p372_p6)
}
 0x1c1   :  { %s376_s15 = scalar_lea.hbm %s466_s3, 128 }
 0x1c2   :  { %p377_p7 = scmp.ne.s32.totalorder %s466_s3, %s376_s15  ;;  %p380_p8 = scmp.lt.u32.totalorder %s376_s15, %s466_s3 }
 0x1c4   :  { %p382_p9 = pnand %p380_p8, %p377_p7 }
 0x1c6   :  { %385 = shalt.err (!%p382_p9)
}
 0x1c7   :  { %250 = dma.vmem_to_hbm [thread:$0]  %s248_s12, 128, %s466_s3, [#allocation4]  }
 0x1c8   :  { %390 = dma.done.wait [#allocation4], 128  }
 0x1c9   :  { %391 = vsyncadd [#allocation4], 4294967168 }
 0x1ca   :  { %254 = vsyncpa [#allocation3], 1 }
 0x1cb   :  { %255 = vsyncpa [#allocation6], 1 }
 0x1cc   :  { %256 = vsyncpa [#allocation4], 1 }

</bundles_post_ra>
